<compile_context>
chip_gen: v6e
topology: v6e:2x2x1
jax: 0.10.0
libtpu: 0.0.40
codegen_flags: <defaults>
</compile_context>

<pallas_src>
import functools

import jax
import jax.numpy as jnp
from jax.experimental import pallas as pl
from jax.experimental.pallas import tpu as pltpu


def _featloss_kernel(f1_ref, f2_ref, out_ref, *, total_rows: int):
    """One B-tile: per-row squared distance -> sigmoid -> masked partial sum."""
    i = pl.program_id(0)
    tb = f1_ref.shape[0]

    # Upcast in-vreg (inputs may be bf16); all arithmetic in f32.
    f1 = f1_ref[...].astype(jnp.float32)                  # (TB, C)
    f2 = f2_ref[...].astype(jnp.float32)                  # (TB, C)
    d = f1 - f2                                           # VPU
    dist = jnp.sum(d * d, axis=-1, keepdims=True)         # (TB, 1), lane reduce (XLU)
    sig = 1.0 / (1.0 + jnp.exp(-dist))                    # (TB, 1), exp on EUP

    # Mask padded rows of the ragged last tile (their input data is unspecified;
    # sigmoid(garbage) would bias the sum). Static skip when B divides evenly.
    if total_rows % tb != 0:
        row = i * tb + jax.lax.broadcasted_iota(jnp.int32, (tb, 1), 0)
        sig = jnp.where(row < total_rows, sig, 0.0)

    # Per-tile partial sum, written lane-dense (replicated across an (8,128)
    # tile) so the output store is a single unmasked vst + dense DMA.
    partial = jnp.sum(sig, axis=0, keepdims=True)          # (1, 1)
    out_ref[0] = jnp.broadcast_to(partial, (8, 128))


def _round_up(x: int, m: int) -> int:
    return ((x + m - 1) // m) * m


def _tpu_params() -> tuple[int, int, int]:
    """Best-effort generation detection.

    Returns (input_buffering_budget_bytes, vmem_limit_bytes, num_tensorcores).
    """
    vmem_cap = None
    try:
        info = pltpu.get_tpu_info()
        vmem_cap = getattr(info, "vmem_capacity_bytes", None)
    except Exception:
        vmem_cap = None
    try:
        kind = jax.devices()[0].device_kind.lower()
    except Exception:
        kind = ""

    # Chips where two TensorCores share the "parallel" grid axis.
    multi_core = any(tag in kind for tag in ("v4", "v5p", "v7"))
    num_cores = 2 if multi_core else 1

    if vmem_cap is not None and vmem_cap >= 96 * 1024 * 1024:
        # v5e/v6e: 128 MiB physical VMEM -> big tiles, raise scoped-VMEM limit.
        input_budget = 44 * 1024 * 1024
        vmem_limit = 64 * 1024 * 1024
    else:
        # v7x (64 MiB physical VMEM) or unknown: leave headroom.
        input_budget = 26 * 1024 * 1024
        vmem_limit = 40 * 1024 * 1024
    return input_budget, vmem_limit, num_cores


def _pick_tb(B: int, C: int, itemsize: int, input_budget: int, num_cores: int) -> int:
    """B-tile size: 2 inputs x 2 pipeline buffers of (tb, C) must fit the budget."""
    tb = input_budget // max(1, 4 * C * itemsize)
    tb = max(8, min(8192, (tb // 8) * 8))          # sublane-aligned; soft 8192-row cap
    tb = min(tb, _round_up(B, 8))                  # don't over-allocate tiny B
    if num_cores >= 2 and B > 8:
        # Ensure the parallel grid has >= num_cores steps so every TC gets work.
        tb = min(tb, _round_up(pl.cdiv(B, num_cores), 8))
    return max(8, tb)


def feat_loss_pallas(feat1: jax.Array, feat2: jax.Array, *, tb: int | None = None) -> jax.Array:
    """Pallas implementation of FeatLoss.forward. Inputs are (B, C), any float dtype."""
    assert feat1.shape == feat2.shape and feat1.ndim == 2
    assert feat1.dtype == feat2.dtype
    B, C = feat1.shape
    itemsize = jnp.dtype(feat1.dtype).itemsize

    input_budget, vmem_limit, num_cores = _tpu_params()
    if tb is None:
        tb = _pick_tb(B, C, itemsize, input_budget, num_cores)
    tb = max(8, (tb // 8) * 8)
    num_tiles = pl.cdiv(B, tb)

    cost = pl.CostEstimate(
        flops=3 * B * C,                                   # sub, mul, add per element
        transcendentals=B,                                 # one exp per row
        bytes_accessed=2 * B * C * itemsize + num_tiles * 8 * 128 * 4,
    )

    partials = pl.pallas_call(
        functools.partial(_featloss_kernel, total_rows=B),
        out_shape=jax.ShapeDtypeStruct((num_tiles, 8, 128), jnp.float32),
        grid=(num_tiles,),
        in_specs=[
            pl.BlockSpec((tb, C), lambda i: (i, 0)),
            pl.BlockSpec((tb, C), lambda i: (i, 0)),
        ],
        out_specs=pl.BlockSpec((1, 8, 128), lambda i: (i, 0, 0)),
        compiler_params=pltpu.CompilerParams(
            dimension_semantics=("parallel",),
            vmem_limit_bytes=vmem_limit,
        ),
        cost_estimate=cost,
    )(feat1, feat2)

    # Tiny final reduction in the wrapper: num_tiles partials -> mean over B rows.
    return jnp.sum(partials[:, 0, 0]) / B


def feat_loss(feat1: jax.Array, feat2: jax.Array) -> jax.Array:
    """Auto-dispatch: plain XLA when total input < 512 KiB (Pallas launch overhead
    dominates), Pallas kernel otherwise."""
    B, C = feat1.shape
    in_bytes = 2 * B * C * jnp.dtype(feat1.dtype).itemsize
    if in_bytes < 512 * 1024:
        f1 = feat1.astype(jnp.float32)
        f2 = feat2.astype(jnp.float32)
        dist = jnp.sum((f1 - f2) ** 2, axis=-1)
        return jnp.mean(1.0 / (1.0 + jnp.exp(-dist)))
    return feat_loss_pallas(feat1, feat2)


def _ref_feat_loss(feat1, feat2):
    f1 = feat1.astype(jnp.float32)
    f2 = feat2.astype(jnp.float32)
    dist = jnp.sum(jnp.abs(f1 - f2) ** 2, axis=-1)
    return jnp.mean(1.0 / (1.0 + jnp.exp(-dist)))


if __name__ == "__main__":
    key = jax.random.PRNGKey(0)

    # (B, C, dtype, tb_override)
    cases = [
        (2, 32, jnp.float32, None),      # tiny: single padded tile, masked rows
        (20, 160, jnp.float32, 8),       # multi-tile parallel grid + ragged last tile
        (16, 128, jnp.bfloat16, None),   # native bf16 inputs, f32 math in-kernel
        (384, 256, jnp.float32, None),   # auto tile sizing / multi-core clamp path
    ]
    for (B, C, dtype, tb) in cases:
        key, k1, k2 = jax.random.split(key, 3)
        f1 = (0.1 * jax.random.normal(k1, (B, C), dtype=jnp.float32)).astype(dtype)
        f2 = (0.1 * jax.random.normal(k2, (B, C), dtype=jnp.float32)).astype(dtype)

        loss = feat_loss_pallas(f1, f2, tb=tb)
        jax.block_until_ready(loss)

        ref = _ref_feat_loss(f1, f2)
        assert jnp.allclose(loss, ref, rtol=1e-5, atol=1e-5), (B, C, dtype, loss, ref)

    # Auto-dispatch path (jnp fallback for tiny shapes) should also agree.
    f1 = 0.1 * jax.random.normal(jax.random.PRNGKey(1), (2, 32), dtype=jnp.float32)
    f2 = 0.1 * jax.random.normal(jax.random.PRNGKey(2), (2, 32), dtype=jnp.float32)
    out = feat_loss(f1, f2)
    jax.block_until_ready(out)
    assert jnp.allclose(out, _ref_feat_loss(f1, f2), rtol=1e-5, atol=1e-5)

    print("KERNEL_OK")
</pallas_src>

<mosaic_0001>
module attributes {stable_mosaic.version = 11 : i64} {
  func.func @_featloss_kernel(%arg0: i32, %arg1: memref<8x32xf32, #tpu.memory_space<vmem>>, %arg2: memref<8x32xf32, #tpu.memory_space<vmem>>, %arg3: memref<1x8x128xf32, #tpu.memory_space<vmem>>) attributes {dimension_semantics = [#tpu.dimension_semantics<parallel>], iteration_bounds = array<i64: 1>, scalar_prefetch = 0 : i64, scratch_operands = 0 : i64, tpu.core_type = #tpu.core_type<tc>, window_params = [{transform_indices = @transform_0, window_bounds = array<i64: 8, 32>}, {transform_indices = @transform_1, window_bounds = array<i64: 8, 32>}, {transform_indices = @transform_2, window_bounds = array<i64: 1, 8, 128>}]} {
    %c0 = arith.constant 0 : index
    %c0_0 = arith.constant 0 : index
    %0 = vector.load %arg1[%c0, %c0_0] : memref<8x32xf32, #tpu.memory_space<vmem>>, vector<8x32xf32>
    %c0_1 = arith.constant 0 : index
    %c0_2 = arith.constant 0 : index
    %1 = vector.load %arg2[%c0_1, %c0_2] : memref<8x32xf32, #tpu.memory_space<vmem>>, vector<8x32xf32>
    %2 = arith.subf %0, %1 : vector<8x32xf32>
    %3 = arith.mulf %2, %2 : vector<8x32xf32>
    %cst = arith.constant dense<0.000000e+00> : vector<8xf32>
    %4 = vector.multi_reduction <add>, %3, %cst [1] : vector<8x32xf32> to vector<8xf32>
    %5 = vector.shape_cast %4 : vector<8xf32> to vector<8x1xf32>
    %cst_3 = arith.constant 0.000000e+00 : f32
    %6 = vector.broadcast %cst_3 : f32 to vector<8x1xf32>
    %7 = arith.subf %6, %5 : vector<8x1xf32>
    %8 = math.exp %7 : vector<8x1xf32>
    %cst_4 = arith.constant 1.000000e+00 : f32
    %9 = vector.broadcast %cst_4 : f32 to vector<8x1xf32>
    %10 = arith.addf %9, %8 : vector<8x1xf32>
    %cst_5 = arith.constant 1.000000e+00 : f32
    %11 = vector.broadcast %cst_5 : f32 to vector<8x1xf32>
    %12 = arith.divf %11, %10 : vector<8x1xf32>
    %c8_i32 = arith.constant 8 : i32
    %13 = arith.muli %arg0, %c8_i32 : i32
    %14 = tpu.iota {dimensions = array<i32: 0>} : vector<8x1xi32>
    %15 = vector.broadcast %13 : i32 to vector<8x1xi32>
    %16 = arith.addi %15, %14 : vector<8x1xi32>
    %c2_i32 = arith.constant 2 : i32
    %17 = vector.broadcast %c2_i32 : i32 to vector<8x1xi32>
    %18 = arith.cmpi slt, %16, %17 : vector<8x1xi32>
    %cst_6 = arith.constant 0.000000e+00 : f32
    %19 = vector.broadcast %cst_6 : f32 to vector<8x1xf32>
    %20 = arith.select %18, %12, %19 : vector<8x1xi1>, vector<8x1xf32>
    %cst_7 = arith.constant dense<0.000000e+00> : vector<1xf32>
    %21 = vector.multi_reduction <add>, %20, %cst_7 [0] : vector<8x1xf32> to vector<1xf32>
    %22 = vector.shape_cast %21 : vector<1xf32> to vector<1x1xf32>
    %23 = vector.shape_cast %22 : vector<1x1xf32> to vector<1x1xf32>
    %24 = vector.broadcast %23 : vector<1x1xf32> to vector<8x128xf32>
    %c0_8 = arith.constant 0 : index
    %c0_9 = arith.constant 0 : index
    %c0_10 = arith.constant 0 : index
    %25 = vector.load %arg3[%c0_8, %c0_9, %c0_10] : memref<1x8x128xf32, #tpu.memory_space<vmem>>, vector<1x8x128xf32>
    %26 = vector.shape_cast %25 : vector<1x8x128xf32> to vector<8x128xf32>
    %27 = vector.shape_cast %24 : vector<8x128xf32> to vector<1x8x128xf32>
    tpu.vector_store %arg3[%c0_8, %c0_9, %c0_10], %27 {strides = array<i32>} : memref<1x8x128xf32, #tpu.memory_space<vmem>>, vector<1x8x128xf32>,
    return
  }
  func.func @transform_0(%arg0: i32) -> (i32, i32) {
    %c0_i32 = arith.constant 0 : i32
    %c0_i32_0 = arith.constant 0 : i32
    return %arg0, %c0_i32 : i32, i32
  }
  func.func @transform_1(%arg0: i32) -> (i32, i32) {
    %c0_i32 = arith.constant 0 : i32
    %c0_i32_0 = arith.constant 0 : i32
    return %arg0, %c0_i32 : i32, i32
  }
  func.func @transform_2(%arg0: i32) -> (i32, i32, i32) {
    %c0_i32 = arith.constant 0 : i32
    %c0_i32_0 = arith.constant 0 : i32
    %c0_i32_1 = arith.constant 0 : i32
    return %arg0, %c0_i32, %c0_i32_0 : i32, i32, i32
  }
}

</mosaic_0001>

<bundles_post_ra>
// kernel: tpu_custom_call.1
= control target key start
LH: loop header
LB: loop body
LE: loop exit
PB: predicated region body
PF: predicated region fallthrough
CT: control target
= control target key end

     0   :  { %7 = vsyncpa [#allocation3], 0  ;;  %s188_s0 = inlined_call_operand.hbm [shape: f32[2,32], index: 0, kind: input, shape index: {}]   ;;  %s189_s1 = inlined_call_operand.hbm [shape: f32[2,32], index: 1, kind: input, shape index: {}]   ;;  %s190_s2 = inlined_call_operand.hbm [shape: f32[1,8,128], index: 2, kind: output, shape index: {}]  }
   0x1   :  { %8 = vsyncpa [#allocation6], 0 }
   0x2   :  { %9 = vsyncpa [#allocation4], 0 }
   0x3   :  { %14 = vsyncadd [#allocation3], 96  ;;  %s159_s9 = smov [#allocation2]  }
   0x4   :  { %s15_s10 = sshll.u32 %s159_s9, 4  ;;  %s16_s10 = int_to_ptr.vmem [resolvable:$true] %s15_s10 }
   0x5   :  { %s101_s11 = scalar_lea.vmem %s16_s10, 32  ;;  %s105_s12 = scalar_lea.vmem %s16_s10, 128 }
   0x6   :  { %p102_p0 = scmp.ne.s32.totalorder %s16_s10, %s101_s11  ;;  %p106_p1 = scmp.lt.s32.totalorder %s16_s10, %s16_s10 }
   0x7   :  { %p107_p2 = scmp.lt.s32.totalorder %s105_s12, %s101_s11 }
   0x9   :  { %p108_p3 = por %p107_p2, %p106_p1 }
   0xb   :  { %p109_p4 = pnand %p108_p3, %p102_p0 }
   0xd   :  { %112 = shalt.err (!%p109_p4)
}
   0xe   :  { %s160_s13 = smov 32   ;;  %s161_s14 = smov 2  }
   0xf   :  { %21 = dma.hbm_to_vmem [thread:$0]  %s188_s0, 32, %s16_s10, [#allocation3], %s160_s13, %s160_s13, %s161_s14  }
  0x10   :  { %26 = vsyncadd [#allocation6], 96  ;;  %s162_s17 = smov [#allocation5]  }
  0x11   :  { %s27_s18 = sshll.u32 %s162_s17, 4  ;;  %s28_s18 = int_to_ptr.vmem [resolvable:$true] %s27_s18 }
  0x12   :  { %s121_s19 = scalar_lea.vmem %s28_s18, 32  ;;  %s125_s20 = scalar_lea.vmem %s28_s18, 128 }
  0x13   :  { %p122_p5 = scmp.ne.s32.totalorder %s28_s18, %s121_s19  ;;  %p126_p6 = scmp.lt.s32.totalorder %s28_s18, %s28_s18 }
  0x14   :  { %p127_p7 = scmp.lt.s32.totalorder %s125_s20, %s121_s19 }
  0x16   :  { %p128_p8 = por %p127_p7, %p126_p6 }
  0x18   :  { %p129_p9 = pnand %p128_p8, %p122_p5 }
  0x1a   :  { %132 = shalt.err (!%p129_p9)
}
  0x1b   :  { %33 = dma.hbm_to_vmem [thread:$0]  %s189_s1, 32, %s28_s18, [#allocation6], %s160_s13, %s160_s13, %s161_s14  }
  0x1c   :  { %153 = dma.done.wait [#allocation3], 128  }
  0x1d   :  { %154 = vsyncadd [#allocation3], 4294967168 }
  0x1e   :  { %155 = dma.done.wait [#allocation6], 128  }
  0x1f   :  { %156 = vsyncadd [#allocation6], 4294967168  ;;  %v40_v0 = vld [vmem:[#allocation2] sm:$0xff]  ;;  %v41_v1 = vld [vmem:[#allocation5] sm:$0xff]  ;;  %vm44_vm0 = vcmask 261120   ;;  %v55_v10 = vlaneseq  ;;  %s163_s0 = smov [#allocation7]  }
  0x20   :  { %v42_v2 = vsub.f32 %v40_v0, %v41_v1  ;;  %s74_s1 = sshll.u32 %s163_s0, 4  ;;  %s75_s1 = int_to_ptr.vmem [resolvable:$true] %s74_s1 }
  0x21   :  { %v56_v11 = vshrl.u32 %v55_v10, 7  ;;  %s133_s23 = scalar_lea.vmem %s75_s1, 128  ;;  %p138_p11 = scmp.lt.s32.totalorder %s75_s1, %s75_s1 }
  0x22   :  { %v43_v3 = vmul.f32 %v42_v2, %v42_v2  ;;  %p134_p10 = scmp.ne.s32.totalorder %s75_s1, %s133_s23  ;;  %p139_p12 = scmp.lt.s32.totalorder %s133_s23, %s133_s23 }
  0x23   :  { %vm59_vm1 = vcmp.lt.s32.totalorder %v56_v11, 2 }
  0x24   :  { %v45_v4 = vsel %vm44_vm0, %v43_v3, 0.0  ;;  %p140_p13 = por %p139_p12, %p138_p11 }
  0x25   :  { %46 = vadd.xlane.f32.xlu0 %v45_v4 }
  0x26   :  { %p141_p0 = pnand %p140_p13, %p134_p10 }
  0xae   :  { %v47_v5 = vpop.xlane.xlu0 %46 }
  0xaf   :  { %v48_v6 = vsub.f32 0.0, %v47_v5 }
  0xb1   :  { %v49_v7 = vmul.f32 1.442695, %v48_v6 }
  0xb3   :  { %89 = vpow2.f32 %v49_v7 }
  0xc0   :  { %v90_v8 = vpop.eup %89 }
  0xc1   :  { %v51_v9 = vadd.f32 1.0, %v90_v8 }
  0xc3   :  { %91 = vrcp.f32 %v51_v9 }
  0xd0   :  { %v92_v12 = vpop.eup %91 }
  0xd1   :  { %v60_v13 = vsel %vm59_vm1, %v92_v12, 0.0 }
  0xd2   :  { %v61_v14 = vrot.slane %v60_v13, 4 }
  0xd4   :  { %v62_v15 = vadd.f32 %v61_v14, %v60_v13 }
  0xd6   :  { %v63_v16 = vrot.slane %v62_v15, 2 }
  0xd8   :  { %v64_v17 = vadd.f32 %v63_v16, %v62_v15 }
  0xda   :  { %v65_v18 = vrot.slane %v64_v17, 1 }
  0xdc   :  { %v66_v19 = vadd.f32 %v65_v18, %v64_v17 }
  0xde   :  { %67 = vst [vmem:[#allocation7] sm:$0xff] %v66_v19 }
  0xdf   :  { %144 = shalt.err (!%p141_p0)
}
  0xe0   :  { %77 = dma.vmem_to_hbm [thread:$0]  %s75_s1, 128, %s190_s2, [#allocation4]  }
  0xe1   :  { %157 = dma.done.wait [#allocation4], 128  }
  0xe2   :  { %158 = vsyncadd [#allocation4], 4294967168 }
  0xe3   :  { %81 = vsyncpa [#allocation3], 1 }
  0xe4   :  { %82 = vsyncpa [#allocation6], 1 }
  0xe5   :  { %83 = vsyncpa [#allocation4], 1 }

</bundles_post_ra>
